<compile_context>
chip_gen: v7x
topology: tpu7x:2x2x1
jax: 0.10.0
libtpu: 0.0.40
codegen_flags: <defaults>
</compile_context>

<pallas_src>
import functools

import jax
import jax.numpy as jnp
from jax import lax
from jax.experimental import pallas as pl
from jax.experimental.pallas import tpu as pltpu


def _contrastive_kernel(rows_ref, colsT_ref, pos_ref, nll_ref, m_sc, l_sc,
                        *, inv_temp, n_pad):
    """One (row-tile, col-tile) step of the collapsed (B, B) contrastive loss.

    rows_ref  : (TM, D) bf16  unit-normalized query rows
    colsT_ref : (D, TN) bf16  unit-normalized key rows, pre-transposed in HBM
    pos_ref   : (TM, 1) f32   exact positive logit S[i,i]/T
    nll_ref   : (TM, 1) f32   per-row nll (written at the last col step)
    m_sc,l_sc : (TM, 1) f32   online-logsumexp running max / off-diagonal sum
    """
    i = pl.program_id(0)
    j = pl.program_id(1)
    tm = rows_ref.shape[0]
    tn = colsT_ref.shape[1]
    inv_t = jnp.float32(inv_temp)

    @pl.when(j == 0)
    def _init():
        m_sc[...] = jnp.full_like(m_sc, -jnp.inf)
        l_sc[...] = jnp.zeros_like(l_sc)

    # Scaled logits for this tile: plain (M,K)@(K,N) matmul on the MXU with
    # f32 accumulation; 1/T applied to the f32 result (one VPU op per step).
    a = jnp.dot(rows_ref[...], colsT_ref[...],
                preferred_element_type=jnp.float32) * inv_t            # (TM, TN)

    # Online logsumexp over all TN columns of this tile.  The diagonal and the
    # padded columns are allowed into the running max (that only shifts the
    # lse, it is mathematically harmless) and are removed from the running
    # sum below, only on the tiles/steps where they actually occur.
    m_prev = m_sc[...]
    m_new = jnp.maximum(m_prev, jnp.max(a, axis=-1, keepdims=True))
    e = jnp.exp(a - m_new)                                             # (TM, TN)
    l_sc[...] = l_sc[...] * jnp.exp(m_prev - m_new) + jnp.sum(
        e, axis=-1, keepdims=True)
    m_sc[...] = m_new

    # Drop the self-similarity terms -- only on tiles crossed by the diagonal.
    row0 = i * tm
    col0 = j * tn

    @pl.when(jnp.logical_and(col0 < row0 + tm, row0 < col0 + tn))
    def _drop_diag():
        rr = lax.broadcasted_iota(jnp.int32, (tm, tn), 0) + row0
        cc = lax.broadcasted_iota(jnp.int32, (tm, tn), 1) + col0
        diag_e = jnp.where(rr == cc, e, jnp.float32(0.0))
        l_sc[...] = l_sc[...] - jnp.sum(diag_e, axis=-1, keepdims=True)

    # Finalize: assemble the 2B-column logsumexp and the per-row nll.
    @pl.when(j == pl.num_programs(1) - 1)
    def _finalize():
        m = m_sc[...]
        l = l_sc[...]
        if n_pad:
            # Padded key columns are all-zero rows -> logit exactly 0; they
            # live only in the last col tile, so each contributed exp(0 - m)
            # with exactly this running max.  (Static branch: n_pad is Python.)
            l = l - jnp.float32(n_pad) * jnp.exp(-m)
        pos = pos_ref[...]
        mf = jnp.maximum(m, pos)
        # Every off-diagonal column appears twice (the two identical feature
        # copies); the unmasked diagonal is added back exactly from `pos`; the
        # masked diagonal contributes exp(-9e15/T - mf) == 0, as in the ref.
        total = 2.0 * l * jnp.exp(m - mf) + jnp.exp(pos - mf)
        nll_ref[...] = (mf - pos) + jnp.log(total)


def _round_up(x, m):
    return (x + m - 1) // m * m


def _choose_tiles(B, d_pad, *, budget_bytes, max_tm, max_tn):
    """Pick (row tile TM, col tile TN, padded batch)."""
    if B < max_tn:
        # Small batch: one full-width column tile (the (8,128) layout rule
        # forbids a narrower lane tile on the transposed key operand).  This
        # is also the small-B fast path: a single column step.
        b_pad = _round_up(B, 8)
        tn = b_pad
    else:
        tn = max_tn
        b_pad = _round_up(B, tn)

    # Row tile: the largest multiple of 8 dividing b_pad that fits the VMEM
    # budget and max_tm; prefer >= 2 row tiles (without dropping below 128
    # rows) so the "parallel" row axis can feed both TensorCores on megacore.
    tm_cap = min(max_tm, b_pad)
    if b_pad >= 256:
        tm_cap = min(tm_cap, max(b_pad // 2, 128))
    tm = 8
    for cand in range(8, tm_cap + 1, 8):
        if b_pad % cand:
            continue
        blk = 2 * (2 * (cand + tn) * d_pad + 8 * cand) + 8 * cand
        if blk > budget_bytes:
            break
        tm = cand
    return tm, tn, b_pad


def contrastive_loss(a, b, temperature=0.1, *, max_tm=512, max_tn=128):
    """a, b: (B, C, T) arrays. Returns the scalar loss (float32).

    Faithful to the reference module, which flattens `a` for BOTH views, so
    `b` does not influence the result.
    """
    B, C, T = a.shape
    del b  # TODO(synk): reference uses a.view(B,-1) for both views; `b` is unused by design.
    D = C * T

    # --- one-time prework in XLA (hoisted out of the grid) -------------------
    f = a.reshape(B, D).astype(jnp.float32)
    ss = jnp.sum(f * f, axis=-1, keepdims=True)                    # (B, 1)
    r = lax.rsqrt(jnp.maximum(ss, jnp.float32(1e-16)))
    fh32 = f * r                                                   # unit rows, f32
    # Exact positive logit cos(a_i, a_i)/T (0 for all-zero rows), kept in f32.
    # (Norm clamp differs from PyTorch's pairwise 1e-7 clamp only for
    #  near-zero rows.)
    pos = ss * (r * r) * jnp.float32(1.0 / float(temperature))     # (B, 1)

    # Pad the feature dim to the lane / MXU tiling and cast to bf16.
    lane = 256 if D >= 256 else 128
    d_pad = _round_up(D, lane)
    if d_pad != D:
        fh32 = jnp.pad(fh32, ((0, 0), (0, d_pad - D)))
    fh = fh32.astype(jnp.bfloat16)                                 # (B, d_pad)

    # --- tiling / VMEM budget (generation aware) -----------------------------
    try:
        info = pltpu.get_tpu_info()
        vmem_cap = int(getattr(info, "vmem_capacity_bytes", 64 * 1024 * 1024))
    except Exception:
        vmem_cap = 64 * 1024 * 1024                 # conservative (v7x-sized)
    scoped_cap = (3 * vmem_cap) // 4                # never request all of VMEM
    tm, tn, b_pad = _choose_tiles(B, d_pad, budget_bytes=(2 * scoped_cap) // 3,
                                  max_tm=max_tm, max_tn=max_tn)
    n_pad = b_pad - B
    if n_pad:
        fh = jnp.pad(fh, ((0, n_pad), (0, 0)))
        pos = jnp.pad(pos, ((0, n_pad), (0, 0)))
    fh_t = fh.T                                     # (d_pad, b_pad) bf16 key operand

    needed = 2 * (2 * (tm + tn) * d_pad + 8 * tm) + 8 * tm
    vmem_limit = int(min(scoped_cap, max(needed + (4 << 20), 32 << 20)))

    kernel = functools.partial(_contrastive_kernel,
                               inv_temp=1.0 / float(temperature), n_pad=n_pad)

    nll = pl.pallas_call(
        kernel,
        out_shape=jax.ShapeDtypeStruct((b_pad, 1), jnp.float32),
        grid_spec=pltpu.PrefetchScalarGridSpec(
            num_scalar_prefetch=0,
            grid=(b_pad // tm, b_pad // tn),
            in_specs=[
                pl.BlockSpec((tm, d_pad), lambda i, j: (i, 0)),  # query rows (unit, bf16)
                pl.BlockSpec((d_pad, tn), lambda i, j: (0, j)),  # key cols (unit, bf16, pre-T)
                pl.BlockSpec((tm, 1), lambda i, j: (i, 0)),      # exact positive logit
            ],
            out_specs=pl.BlockSpec((tm, 1), lambda i, j: (i, 0)),
            scratch_shapes=[
                pltpu.VMEM((tm, 1), jnp.float32),   # running max
                pltpu.VMEM((tm, 1), jnp.float32),   # running off-diagonal sum
            ],
        ),
        compiler_params=pltpu.CompilerParams(
            dimension_semantics=("parallel", "arbitrary"),
            vmem_limit_bytes=vmem_limit),
    )(fh, fh_t, pos)

    # mean over the 2B reference rows == mean over these B rows (identical halves).
    return jnp.sum(nll[:B, 0]) / jnp.float32(B)


def _reference_loss(a, b, temperature=0.1):
    """Pure-JAX f32 reference mirroring the PyTorch forward."""
    B = a.shape[0]
    a_flat = a.reshape(B, -1)
    b_flat = a.reshape(B, -1)          # the module reuses `a` here
    feats = jnp.concatenate([a_flat, b_flat], axis=0)
    norms = jnp.maximum(jnp.linalg.norm(feats, axis=-1, keepdims=True), 1e-8)
    fh = feats / norms
    cos = fh @ fh.T
    n = cos.shape[0]
    eye = jnp.eye(n, dtype=bool)
    cos = jnp.where(eye, -9e15, cos)
    cos = cos / temperature
    pos_mask = jnp.roll(eye, shift=n // 2, axis=0)
    pos = jnp.sum(jnp.where(pos_mask, cos, 0.0), axis=-1)
    lse = jax.scipy.special.logsumexp(cos, axis=-1)
    return jnp.mean(-pos + lse)


if __name__ == "__main__":
    key = jax.random.PRNGKey(0)
    k1, k2, k3, k4 = jax.random.split(key, 4)

    # 1) Small batch, forced tiny row tile -> (2, 1) grid: exercises the
    #    "parallel" row axis and the per-row-tile init / finalize.
    B, C, T = 16, 8, 32
    a = jax.random.normal(k1, (B, C, T), dtype=jnp.float32)
    b = jax.random.normal(k2, (B, C, T), dtype=jnp.float32)
    loss = jax.block_until_ready(contrastive_loss(a, b, temperature=0.1, max_tm=8))
    ref = jax.block_until_ready(_reference_loss(a, b, temperature=0.1))
    assert jnp.allclose(loss, ref, rtol=2e-2, atol=1e-3), (loss, ref)

    # 2) Multi-tile config -> (2, 2) grid: exercises the online logsumexp
    #    across column tiles and the pl.when-gated diagonal correction.
    B2, C2, T2 = 256, 4, 32
    a2 = jax.random.normal(k3, (B2, C2, T2), dtype=jnp.float32)
    loss2 = jax.block_until_ready(contrastive_loss(a2, a2, temperature=0.1))
    ref2 = jax.block_until_ready(_reference_loss(a2, a2, temperature=0.1))
    assert jnp.allclose(loss2, ref2, rtol=2e-2, atol=1e-3), (loss2, ref2)

    # 3) Ragged batch (B=6 pads to 8): exercises the padded-column correction.
    B3, C3, T3 = 6, 4, 16
    a3 = jax.random.normal(k4, (B3, C3, T3), dtype=jnp.float32)
    loss3 = jax.block_until_ready(contrastive_loss(a3, a3, temperature=0.1))
    ref3 = jax.block_until_ready(_reference_loss(a3, a3, temperature=0.1))
    assert jnp.allclose(loss3, ref3, rtol=2e-2, atol=1e-3), (loss3, ref3)

    print("KERNEL_OK")
</pallas_src>

<mosaic_0001>
module attributes {stable_mosaic.version = 11 : i64} {
  func.func @_contrastive_kernel(%arg0: i32, %arg1: i32, %arg2: memref<8x256xbf16, #tpu.memory_space<vmem>>, %arg3: memref<256x16xbf16, #tpu.memory_space<vmem>>, %arg4: memref<8x1xf32, #tpu.memory_space<vmem>>, %arg5: memref<8x1xf32, #tpu.memory_space<vmem>>, %arg6: memref<8x1xf32, #tpu.memory_space<vmem>>, %arg7: memref<8x1xf32, #tpu.memory_space<vmem>>) attributes {dimension_semantics = [#tpu.dimension_semantics<parallel>, #tpu.dimension_semantics<arbitrary>], iteration_bounds = array<i64: 2, 1>, scalar_prefetch = 0 : i64, scratch_operands = 2 : i64, tpu.core_type = #tpu.core_type<tc>, window_params = [{transform_indices = @transform_0, window_bounds = array<i64: 8, 256>}, {transform_indices = @transform_1, window_bounds = array<i64: 256, 16>}, {transform_indices = @transform_2, window_bounds = array<i64: 8, 1>}, {transform_indices = @transform_3, window_bounds = array<i64: 8, 1>}]} {
    %c0_i32 = arith.constant 0 : i32
    %0 = arith.cmpi eq, %arg1, %c0_i32 : i32
    %1 = arith.extui %0 : i1 to i32
    %c0_i32_0 = arith.constant 0 : i32
    %2 = arith.cmpi ne, %1, %c0_i32_0 : i32
    scf.if %2 {
      %cst_20 = arith.constant 0xFF800000 : f32
      %36 = vector.broadcast %cst_20 : f32 to vector<8x1xf32>
      %c0_21 = arith.constant 0 : index
      %c0_22 = arith.constant 0 : index
      %37 = vector.load %arg6[%c0_21, %c0_22] : memref<8x1xf32, #tpu.memory_space<vmem>>, vector<8x1xf32>
      tpu.vector_store %arg6[%c0_21, %c0_22], %36 {strides = array<i32>} : memref<8x1xf32, #tpu.memory_space<vmem>>, vector<8x1xf32>,
      %cst_23 = arith.constant 0.000000e+00 : f32
      %38 = vector.broadcast %cst_23 : f32 to vector<8x1xf32>
      %c0_24 = arith.constant 0 : index
      %c0_25 = arith.constant 0 : index
      %39 = vector.load %arg7[%c0_24, %c0_25] : memref<8x1xf32, #tpu.memory_space<vmem>>, vector<8x1xf32>
      tpu.vector_store %arg7[%c0_24, %c0_25], %38 {strides = array<i32>} : memref<8x1xf32, #tpu.memory_space<vmem>>, vector<8x1xf32>,
    } else {
    }
    %c0 = arith.constant 0 : index
    %c0_1 = arith.constant 0 : index
    %3 = vector.load %arg2[%c0, %c0_1] : memref<8x256xbf16, #tpu.memory_space<vmem>>, vector<8x256xbf16>
    %c0_2 = arith.constant 0 : index
    %c0_3 = arith.constant 0 : index
    %4 = vector.load %arg3[%c0_2, %c0_3] : memref<256x16xbf16, #tpu.memory_space<vmem>>, vector<256x16xbf16>
    %cst = arith.constant dense<0.000000e+00> : vector<8x16xf32>
    %5 = tpu.matmul %3, %4, %cst {dimension_numbers = #tpu.dot_dimension_numbers<[1], [0], [0], [1], [0, 0, 1, 1], [], []>} : vector<8x256xbf16>, vector<256x16xbf16>, vector<8x16xf32> -> vector<8x16xf32>
    %cst_4 = arith.constant 1.000000e+01 : f32
    %6 = vector.broadcast %cst_4 : f32 to vector<8x16xf32>
    %7 = arith.mulf %5, %6 : vector<8x16xf32>
    %c0_5 = arith.constant 0 : index
    %c0_6 = arith.constant 0 : index
    %8 = vector.load %arg6[%c0_5, %c0_6] : memref<8x1xf32, #tpu.memory_space<vmem>>, vector<8x1xf32>
    %cst_7 = arith.constant dense<0xFF800000> : vector<8xf32>
    %9 = vector.multi_reduction <maximumf>, %7, %cst_7 [1] : vector<8x16xf32> to vector<8xf32>
    %10 = vector.shape_cast %9 : vector<8xf32> to vector<8x1xf32>
    %11 = arith.maximumf %8, %10 : vector<8x1xf32>
    %12 = vector.broadcast %11 : vector<8x1xf32> to vector<8x16xf32>
    %13 = arith.subf %7, %12 : vector<8x16xf32>
    %14 = math.exp %13 : vector<8x16xf32>
    %c0_8 = arith.constant 0 : index
    %c0_9 = arith.constant 0 : index
    %15 = vector.load %arg7[%c0_8, %c0_9] : memref<8x1xf32, #tpu.memory_space<vmem>>, vector<8x1xf32>
    %16 = arith.subf %8, %11 : vector<8x1xf32>
    %17 = math.exp %16 : vector<8x1xf32>
    %18 = arith.mulf %15, %17 : vector<8x1xf32>
    %cst_10 = arith.constant dense<0.000000e+00> : vector<8xf32>
    %19 = vector.multi_reduction <add>, %14, %cst_10 [1] : vector<8x16xf32> to vector<8xf32>
    %20 = vector.shape_cast %19 : vector<8xf32> to vector<8x1xf32>
    %21 = arith.addf %18, %20 : vector<8x1xf32>
    %c0_11 = arith.constant 0 : index
    %c0_12 = arith.constant 0 : index
    %22 = vector.load %arg7[%c0_11, %c0_12] : memref<8x1xf32, #tpu.memory_space<vmem>>, vector<8x1xf32>
    tpu.vector_store %arg7[%c0_11, %c0_12], %21 {strides = array<i32>} : memref<8x1xf32, #tpu.memory_space<vmem>>, vector<8x1xf32>,
    %c0_13 = arith.constant 0 : index
    %c0_14 = arith.constant 0 : index
    %23 = vector.load %arg6[%c0_13, %c0_14] : memref<8x1xf32, #tpu.memory_space<vmem>>, vector<8x1xf32>
    tpu.vector_store %arg6[%c0_13, %c0_14], %11 {strides = array<i32>} : memref<8x1xf32, #tpu.memory_space<vmem>>, vector<8x1xf32>,
    %c8_i32 = arith.constant 8 : i32
    %24 = arith.muli %arg0, %c8_i32 : i32
    %c16_i32 = arith.constant 16 : i32
    %25 = arith.muli %arg1, %c16_i32 : i32
    %c8_i32_15 = arith.constant 8 : i32
    %26 = arith.addi %24, %c8_i32_15 : i32
    %27 = arith.cmpi slt, %25, %26 : i32
    %c16_i32_16 = arith.constant 16 : i32
    %28 = arith.addi %25, %c16_i32_16 : i32
    %29 = arith.cmpi slt, %24, %28 : i32
    %30 = arith.andi %27, %29 : i1
    %31 = arith.extui %30 : i1 to i32
    %c0_i32_17 = arith.constant 0 : i32
    %32 = arith.cmpi ne, %31, %c0_i32_17 : i32
    scf.if %32 {
      %36 = tpu.iota {dimensions = array<i32: 0>} : vector<8x16xi32>
      %37 = vector.broadcast %24 : i32 to vector<8x16xi32>
      %38 = arith.addi %36, %37 : vector<8x16xi32>
      %39 = tpu.iota {dimensions = array<i32: 1>} : vector<8x16xi32>
      %40 = vector.broadcast %25 : i32 to vector<8x16xi32>
      %41 = arith.addi %39, %40 : vector<8x16xi32>
      %42 = arith.cmpi eq, %38, %41 : vector<8x16xi32>
      %cst_20 = arith.constant 0.000000e+00 : f32
      %43 = vector.broadcast %cst_20 : f32 to vector<8x16xf32>
      %44 = arith.select %42, %14, %43 : vector<8x16xi1>, vector<8x16xf32>
      %c0_21 = arith.constant 0 : index
      %c0_22 = arith.constant 0 : index
      %45 = vector.load %arg7[%c0_21, %c0_22] : memref<8x1xf32, #tpu.memory_space<vmem>>, vector<8x1xf32>
      %cst_23 = arith.constant dense<0.000000e+00> : vector<8xf32>
      %46 = vector.multi_reduction <add>, %44, %cst_23 [1] : vector<8x16xf32> to vector<8xf32>
      %47 = vector.shape_cast %46 : vector<8xf32> to vector<8x1xf32>
      %48 = arith.subf %45, %47 : vector<8x1xf32>
      %c0_24 = arith.constant 0 : index
      %c0_25 = arith.constant 0 : index
      %49 = vector.load %arg7[%c0_24, %c0_25] : memref<8x1xf32, #tpu.memory_space<vmem>>, vector<8x1xf32>
      tpu.vector_store %arg7[%c0_24, %c0_25], %48 {strides = array<i32>} : memref<8x1xf32, #tpu.memory_space<vmem>>, vector<8x1xf32>,
    } else {
    }
    %c0_i32_18 = arith.constant 0 : i32
    %33 = arith.cmpi eq, %arg1, %c0_i32_18 : i32
    %34 = arith.extui %33 : i1 to i32
    %c0_i32_19 = arith.constant 0 : i32
    %35 = arith.cmpi ne, %34, %c0_i32_19 : i32
    scf.if %35 {
      %c0_20 = arith.constant 0 : index
      %c0_21 = arith.constant 0 : index
      %36 = vector.load %arg6[%c0_20, %c0_21] : memref<8x1xf32, #tpu.memory_space<vmem>>, vector<8x1xf32>
      %c0_22 = arith.constant 0 : index
      %c0_23 = arith.constant 0 : index
      %37 = vector.load %arg7[%c0_22, %c0_23] : memref<8x1xf32, #tpu.memory_space<vmem>>, vector<8x1xf32>
      %c0_24 = arith.constant 0 : index
      %c0_25 = arith.constant 0 : index
      %38 = vector.load %arg4[%c0_24, %c0_25] : memref<8x1xf32, #tpu.memory_space<vmem>>, vector<8x1xf32>
      %39 = arith.maximumf %36, %38 : vector<8x1xf32>
      %cst_26 = arith.constant 2.000000e+00 : f32
      %40 = vector.broadcast %cst_26 : f32 to vector<8x1xf32>
      %41 = arith.mulf %40, %37 : vector<8x1xf32>
      %42 = arith.subf %36, %39 : vector<8x1xf32>
      %43 = math.exp %42 : vector<8x1xf32>
      %44 = arith.mulf %41, %43 : vector<8x1xf32>
      %45 = arith.subf %38, %39 : vector<8x1xf32>
      %46 = math.exp %45 : vector<8x1xf32>
      %47 = arith.addf %44, %46 : vector<8x1xf32>
      %48 = arith.subf %39, %38 : vector<8x1xf32>
      %49 = math.log %47 : vector<8x1xf32>
      %50 = arith.addf %48, %49 : vector<8x1xf32>
      %c0_27 = arith.constant 0 : index
      %c0_28 = arith.constant 0 : index
      %51 = vector.load %arg5[%c0_27, %c0_28] : memref<8x1xf32, #tpu.memory_space<vmem>>, vector<8x1xf32>
      tpu.vector_store %arg5[%c0_27, %c0_28], %50 {strides = array<i32>} : memref<8x1xf32, #tpu.memory_space<vmem>>, vector<8x1xf32>,
    } else {
    }
    return
  }
  func.func @transform_0(%arg0: i32, %arg1: i32) -> (i32, i32) {
    %c0_i32 = arith.constant 0 : i32
    %c0_i32_0 = arith.constant 0 : i32
    return %arg0, %c0_i32 : i32, i32
  }
  func.func @transform_1(%arg0: i32, %arg1: i32) -> (i32, i32) {
    %c0_i32 = arith.constant 0 : i32
    %c0_i32_0 = arith.constant 0 : i32
    return %c0_i32, %arg1 : i32, i32
  }
  func.func @transform_2(%arg0: i32, %arg1: i32) -> (i32, i32) {
    %c0_i32 = arith.constant 0 : i32
    %c0_i32_0 = arith.constant 0 : i32
    return %arg0, %c0_i32 : i32, i32
  }
  func.func @transform_3(%arg0: i32, %arg1: i32) -> (i32, i32) {
    %c0_i32 = arith.constant 0 : i32
    %c0_i32_0 = arith.constant 0 : i32
    return %arg0, %c0_i32 : i32, i32
  }
}

</mosaic_0001>

<bundles_post_ra>
// kernel: tpu_custom_call.1
= control target key start
LH: loop header
LB: loop body
LE: loop exit
PB: predicated region body
PF: predicated region fallthrough
CT: control target
= control target key end

     0   :  { %s720_s12 = smov 0   ;;  %s722_s13 = smov 0   ;;  %s833_s0 = inlined_call_operand.vmem [shape: bf16[16,256], index: 0, kind: input, shape index: {}]   ;;  %s834_s1 = inlined_call_operand.vmem [shape: bf16[256,16], index: 1, kind: input, shape index: {}]   ;;  %s835_s2 = inlined_call_operand.vmem [shape: f32[16,1], index: 2, kind: input, shape index: {}]   ;;  %s836_s3 = inlined_call_operand.vmem [shape: f32[16,1], index: 3, kind: output, shape index: {}]  }
   0x1   :  { %s724_s14 = smov 0  }
   0x2 LB: > { %s25_s15 = sadd.s32 1, %s691_s13  ;;  %p567_p0 = scmp.ge.s32.totalorder %s695_s14, 1  ;;  %s695_s14 = sphi %s724_s14, %s13_s14   ;;  %s691_s13 = sphi %s722_s13, %s838_s13   ;;  %s687_s12 = sphi %s720_s12, %s837_s12  }
   0x3   : > { %p27_p1 = scmp.ge.s32.totalorder %s25_s15, 2  ;;  %p167_p2 = scmp.lt.s32.totalorder %s695_s14, 3 }
   0x5   : > { %s840_s15 = smov (%p27_p1, %s25_s15), 0  ;;  %p168_p3 = pnand %p567_p0, %p167_p2 }
   0x6   : > { %v645_v0 = vld [vmem:[%s834_s1 + $0x40] sm:$0xff] (!%p168_p3)   ;;  %p198_p4 = scmp.lt.s32.totalorder (!%p168_p3), %s687_s12, 1  ;;  %v647_v2 = vld [vmem:[%s834_s1 + $0x48] sm:$0xff] (!%p168_p3)   ;;  %v649_v4 = vld [vmem:[%s834_s1 + $0x50] sm:$0xff] (!%p168_p3)   ;;  %vm220_vm0 = vcmask (!%p168_p3), 7168   ;;  %v697_v19 = vmov (!%p168_p3), -inf  }
   0x7   : > { %171 = sbr.rel (%p168_p3) target bundleno = 739 (0x2e3), region = 32  ;;  %v646_v1 = vld [vmem:[%s834_s1] sm:$0xff] (!%p168_p3)   ;;  %595 = vmatprep.subr.bf16.mxu0 (!%p168_p3), %v645_v0  ;;  %v648_v3 = vld [vmem:[%s834_s1 + $0x8] sm:$0xff] (!%p168_p3)   ;;  %v650_v5 = vld [vmem:[%s834_s1 + $0x10] sm:$0xff] (!%p168_p3)   ;;  %221 = vst.msk [vmem:[#allocation2] sm:$0xff] (!%p168_p3), %vm220_vm0, %v697_v19  ;;  %vm401_vm1 = vcmask (!%p168_p3), 130048  }
   0x8   : > { %596 = vmatpush3.bf16.msra.mxu0 (!%p168_p3), %v646_v1  ;;  %v651_v6 = vld [vmem:[%s834_s1 + $0x58] sm:$0xff] (!%p168_p3)   ;;  %v653_v8 = vld [vmem:[%s834_s1 + $0x60] sm:$0xff] (!%p168_p3)   ;;  %v655_v10 = vld [vmem:[%s834_s1 + $0x68] sm:$0xff] (!%p168_p3)   ;;  %v698_v27 = vmov (!%p168_p3), 0   ;;  %v699_v28 = vmov (!%p168_p3), 0.0   ;;  %s590_s16 = sshll.u32 (!%p168_p3), %s687_s12, 3 }
   0x9   : > { %597 = vmatprep.subr.bf16.mxu0 (!%p168_p3), %v647_v2  ;;  %v652_v7 = vld [vmem:[%s834_s1 + $0x18] sm:$0xff] (!%p168_p3)   ;;  %v654_v9 = vld [vmem:[%s834_s1 + $0x20] sm:$0xff] (!%p168_p3)   ;;  %v656_v13 = vld [vmem:[%s834_s1 + $0x28] sm:$0xff] (!%p168_p3)   ;;  %644 = vset.pattern.permute.xlu0 (!%p168_p3), %v698_v27  ;;  %222 = vst.msk [vmem:[#allocation3] sm:$0xff] (!%p168_p3), %vm220_vm0, %v699_v28  ;;  %s428_s17 = sadd.s32 (!%p168_p3), 8, %s590_s16  ;;  %p431_p6 = scmp.lt.s32.totalorder (!%p168_p3), %s590_s16, 16 }
   0xa   : > { %v657_v14 = vld [vmem:[%s834_s1 + $0x70] sm:$0xff] (!%p168_p3)   ;;  %v659_v16 = vld [vmem:[%s834_s1 + $0x78] sm:$0xff] (!%p168_p3)   ;;  %p591_p5 = scmp.gt.s32.totalorder (!%p168_p3), %s428_s17, 0 }
   0xb   : > { %v658_v15 = vld [vmem:[%s834_s1 + $0x30] sm:$0xff] (!%p168_p3)   ;;  %v660_v17 = vld [vmem:[%s834_s1 + $0x38] sm:$0xff] (!%p168_p3)  }
   0xc   : > { %598 = vmatpush3.bf16.msra.mxu0 (!%p168_p3), %v648_v3  ;;  %p432_p7 = pnand (!%p168_p3), %p591_p5, %p431_p6 }
   0xd   : > { %599 = vmatprep.subr.bf16.mxu0 (!%p168_p3), %v649_v4 }
   0xe   : > { %s199_s22 = scalar_select %p198_p4, %s687_s12, 1  ;;  %v400_v29 = vld [vmem:[#allocation2] sm:$0xff] }
   0xf   : > { %v436_v44 = vlaneseq (!%p432_p7)  ;;  %v438_v45 = vstv (!%p432_p7), %s590_s16 }
  0x10   : > { %s757_s27 = sshll.u32 %s199_s22, 3  ;;  %600 = vmatpush3.bf16.msra.mxu0 %v650_v5  ;;  %v414_v40 = vld [vmem:[#allocation3] sm:$0xff] }
  0x11   : > { %s210_s30 = scalar_lea.vmem %s835_s2, %s757_s27  ;;  %s214_s6 = scalar_lea.vmem %s836_s3, %s757_s27  ;;  %601 = vmatprep.subr.bf16.mxu0 %v651_v6  ;;  %v437_v46 = vshrl.u32 (!%p432_p7), %v436_v44, 7  ;;  %v441_v47 = vand.u32 (!%p432_p7), 127, %v436_v44 }
  0x12   : > { %s202_s21 = scalar_lea.vmem %s833_s0, %s757_s27 }
  0x13   : > { %v223_v11 = vld [vmem:[%s202_s21] sm:$0xff]  ;;  %v439_v48 = vadd.s32 (!%p432_p7), %v438_v45, %v437_v46 }
  0x14   : > { %602 = vmatpush3.bf16.msra.mxu0 %v652_v7  ;;  %v573_v12 = vcombine.high %v223_v11, %v223_v11  ;;  %v572_v18 = vcombine.low %v223_v11, %v223_v11 }
  0x15   : > { %603 = vmatprep.subr.bf16.mxu0 %v653_v8  ;;  %vm444_vm2 = vcmp.eq.s32.totalorder (!%p432_p7), %v439_v48, %v441_v47 }
  0x16   : > { %391 = vmatprep.mubr.bf16.mxu0 %v573_v12 }
  0x18   : > { %604 = vmatpush3.bf16.msra.mxu0 %v654_v9 }
  0x19   : > { %605 = vmatprep.subr.bf16.mxu0 %v655_v10 }
  0x1c   : > { %606 = vmatpush3.bf16.msra.mxu0 %v656_v13 }
  0x1d   : > { %607 = vmatprep.subr.bf16.mxu0 %v657_v14 }
  0x20   : > { %608 = vmatpush3.bf16.msra.mxu0 %v658_v15 }
  0x21   : > { %609 = vmatprep.subr.bf16.mxu0 %v659_v16 }
  0x24   : > { %610 = vmatpush3.bf16.msra.mxu0 %v660_v17 }
  0x27   : > { %392 = vmatmul.mubr.bf16.vlgmr.msra.gmra.mrb[0].mxu0 %v572_v18 }
  0xfa   : > { %v611_v20 = vpop.f32.mrb[0].mxu0 }
  0xfb   : > { %v612_v21 = vpop.f32.mrb[1].mxu0 }
  0xfc   : > { %v613_v22 = vadd.f32 %v612_v21, %v611_v20  ;;  %v614_v23 = vpop.f32.mrb[2].mxu0 }
  0xfd   : > { %v615_v24 = vpop.f32.mrb[3].mxu0 }
  0xfe   : > { %v399_v25 = vmul.f32 10.0, %v613_v22 }
 0x100   : > { %v402_v26 = vsel %vm401_vm1, %v399_v25, -inf }
 0x101   : > { %403 = vmax.xlane.f32.xlu0 %v402_v26 }
 0x18e   : > { %v404_v30 = vpop.xlane.xlu0 %403 }
 0x18f   : > { %v405_v31 = vmax.f32 %v400_v29, %v404_v30 }
 0x191   : > { %v415_v32 = vsub.f32 %v400_v29, %v405_v31  ;;  %425 = vst.msk [vmem:[#allocation2] sm:$0xff] %vm220_vm0, %v405_v31  ;;  %408 = vperm.xlu0 %644, %v405_v31  }
 0x193   : > { %v416_v38 = vmul.f32 1.442695, %v415_v32 }
 0x210   : > { %v409_v33 = vpop.permute.xlu0 %408 }
 0x211   : > { %v411_v34 = vsub.f32 %v399_v25, %v409_v33 }
 0x213   : > { %v412_v35 = vmul.f32 1.442695, %v411_v34 }
 0x215   : > { %663 = vpow2.f32 %v412_v35 }
 0x216   : > { %665 = vpow2.f32 %v416_v38 }
 0x21f   : > { %v664_v36 = vpop.eup %663 }
 0x220   : > { %v419_v37 = vsel %vm401_vm1, %v664_v36, 0.0  ;;  %v666_v39 = vpop.eup %665  ;;  %v445_v49 = vsel (!%p432_p7), %vm444_vm2, %v664_v36, 0.0 }
 0x221   : > { %420 = vadd.xlane.f32.xlu1 %v419_v37  ;;  %v418_v41 = vmul.f32 %v666_v39, %v414_v40  ;;  %v447_v50 = vsel (!%p432_p7), %vm401_vm1, %v445_v49, 0.0 }
 0x222   : > { %448 = vadd.xlane.f32.xlu0 (!%p432_p7), %v447_v50 }
 0x2ab   : > { %435 = sbr.rel (%p432_p7) target bundleno = 700 (0x2bc), region = 40 }
 0x2ae   : > { %v421_v42 = vpop.xlane.xlu1 %420 }
 0x2af   : > { %v422_v43 = vadd.f32 %v421_v42, %v418_v41  ;;  %v449_v52 = vpop.xlane.xlu0 (!%p432_p7), %448 }
 0x2b1   : > { %424 = vst.msk [vmem:[#allocation3] sm:$0xff] %vm220_vm0, %v422_v43 }
 0x2b8   : > { %v446_v51 = vld [vmem:[#allocation3] sm:$0xff] }
 0x2b9   : > { %v450_v53 = vsub.f32 %v446_v51, %v449_v52 }
 0x2bb   : > { %451 = vst.msk [vmem:[#allocation3] sm:$0xff] %vm220_vm0, %v450_v53 }
 0x2bc PF: > { %v455_v54 = vld [vmem:[#allocation2] sm:$0xff] }
 0x2bd   : > { %v457_v55 = vld [vmem:[%s210_s30] sm:$0xff] }
 0x2be   : > { %v458_v56 = vmax.f32 %v455_v54, %v457_v55 }
 0x2c0   : > { %v460_v57 = vsub.f32 %v455_v54, %v458_v56  ;;  %v464_v58 = vsub.f32 %v457_v55, %v458_v56  ;;  %v468_v3 = vsub.f32 %v458_v56, %v457_v55 }
 0x2c2   : > { %v461_v59 = vmul.f32 1.442695, %v460_v57  ;;  %v465_v60 = vmul.f32 1.442695, %v464_v58  ;;  %v456_v61 = vld [vmem:[#allocation3] sm:$0xff] }
 0x2c3   : > { %v459_v62 = vmul.f32 2.0, %v456_v61 }
 0x2c4   : > { %667 = vpow2.f32 %v461_v59 }
 0x2c5   : > { %669 = vpow2.f32 %v465_v60 }
 0x2ce   : > { %v668_v63 = vpop.eup %667 }
 0x2cf   : > { %v670_v0 = vpop.eup %669  ;;  %v463_v1 = vmul.f32 %v668_v63, %v459_v62 }
 0x2d1   : > { %v467_v2 = vadd.f32 %v670_v0, %v463_v1 }
 0x2d3   : > { %671 = vlog2.f32 %v467_v2 }
 0x2dd   : > { %v672_v4 = vpop.eup %671 }
 0x2de   : > { %v470_v5 = vmul.f32 0.6931472, %v672_v4 }
 0x2e0   : > { %v471_v6 = vadd.f32 %v470_v5, %v468_v3 }
 0x2e2   : > { %472 = vst.msk [vmem:[%s214_s6] sm:$0xff] %vm220_vm0, %v471_v6 }
 0x2e3 PF: > { %s13_s14 = sadd.s32 1, %s695_s14   ;;  %s837_s12 = smov %s691_s13 }
 0x2e4   : > { %p10_p8 = scmp.ge.s32.totalorder %s13_s14, 4   ;;  %s838_s13 = smov %s840_s15 }
 0x2e6   :  { %12 = sbr.rel (!%p10_p8) target bundleno = 2 (0x2), region = 80 }

</bundles_post_ra>
